<compile_context>
chip_gen: v5e
topology: v5e:2x2
jax: 0.10.0
libtpu: 0.0.40
codegen_flags: <defaults>
</compile_context>

<pallas_src>
import jax
import jax.numpy as jnp
from jax.experimental import pallas as pl
from jax.experimental.pallas import tpu as pltpu


def _round_up(x, m):
    return (x + m - 1) // m * m


def _round_down(x, m):
    return x // m * m


# ---------------------------------------------------------------------------
# Kernels
# ---------------------------------------------------------------------------

def _linear_single_k_kernel(x_ref, w_ref, b_ref, o_ref):
    # x: [tm, K]  (compute dtype, e.g. bf16)
    # w: [K, tn]  weight already in [K, N] "NN" layout -> no XLU relayout
    # b: [1, tn]  f32 bias
    # o: [tm, tn] output tile
    acc = jnp.dot(x_ref[...], w_ref[...], preferred_element_type=jnp.float32)
    o_ref[...] = (acc + b_ref[...]).astype(o_ref.dtype)


def _linear_multi_k_kernel(x_ref, w_ref, b_ref, o_ref, acc_ref):
    # Same as above but K is tiled; acc_ref is an f32 VMEM accumulator.
    k = pl.program_id(2)

    @pl.when(k == 0)
    def _():
        acc_ref[...] = jnp.zeros_like(acc_ref)

    acc_ref[...] += jnp.dot(x_ref[...], w_ref[...],
                            preferred_element_type=jnp.float32)

    @pl.when(k == pl.num_programs(2) - 1)
    def _():
        o_ref[...] = (acc_ref[...] + b_ref[...]).astype(o_ref.dtype)


# ---------------------------------------------------------------------------
# Generation-aware VMEM ceiling
# ---------------------------------------------------------------------------

def _vmem_cap_bytes():
    try:
        phys = pltpu.get_tpu_info().vmem_capacity_bytes
    except Exception:
        phys = 64 * 1024 * 1024          # assume worst case (v7x) if unknown
    if phys <= 80 * 1024 * 1024:         # v7x: 64 MiB physical per TC
        return 40 * 1024 * 1024
    return 96 * 1024 * 1024              # v5e / v6e: 128 MiB physical


# ---------------------------------------------------------------------------
# One-time (init-time) parameter preparation
# ---------------------------------------------------------------------------

def prepare_classifier_params(weight, bias, *, compute_dtype=jnp.bfloat16,
                              tm_max=512):
    """Prepare nn.Linear params once: transpose to [K, N], pad, cast.

    weight: [output_size, zn_size] (PyTorch layout)
    bias:   [output_size]
    """
    n, k = weight.shape
    cap = _vmem_cap_bytes()
    c_item = jnp.dtype(compute_dtype).itemsize

    # --- output-column tile (lane-dense stores) ---
    n_pad128 = _round_up(n, 128)
    tn = min(512, n_pad128)
    # Keep >= 2 output-column tiles when N allows so both v7x TensorCores get
    # work even if M fits a single tile (neutral on single-TC v5e/v6e).
    if n_pad128 > 128 and n_pad128 // tn < 2:
        tn = max(128, _round_down(n_pad128 // 2, 128))
    n_pad = _round_up(n, tn)

    # --- K tile: full K whenever the double-buffered VMEM budget allows ---
    k_full = _round_up(k, 128)
    fixed = (2 * tm_max * tn * 4          # double-buffered output tile (worst case f32)
             + tm_max * tn * 4            # f32 accumulator (multi-K worst case)
             + 2 * tn * 4                 # bias
             + 4 * 1024 * 1024)           # Mosaic internal scratch headroom
    per_k = 2 * (tm_max * c_item + tn * c_item)   # x + w tiles, double-buffered
    tk_budget = max(128, _round_down(max(cap - fixed, 0) // per_k, 128))
    tk = k_full if k_full <= tk_budget else tk_budget
    k_pad = _round_up(k, tk)

    w_kn = weight.T                        # one-time transpose to [K, N]
    if (k_pad, n_pad) != (k, n):
        w_kn = jnp.pad(w_kn, ((0, k_pad - k), (0, n_pad - n)))
    w_kn = w_kn.astype(compute_dtype)

    b2d = bias.astype(jnp.float32)
    if n_pad != n:
        b2d = jnp.pad(b2d, ((0, n_pad - n),))
    b2d = b2d.reshape(1, n_pad)

    # TODO(synk): optional fp8 weight path for v7x (quantize once at init).
    return {
        "w_kn": w_kn, "b2d": b2d,
        "n": n, "k": k, "n_pad": n_pad, "k_pad": k_pad,
        "tn": tn, "tk": tk, "compute_dtype": compute_dtype,
        "vmem_cap": cap,
    }


# ---------------------------------------------------------------------------
# Per-call apply
# ---------------------------------------------------------------------------

def _pick_tm(m):
    if m <= 128:
        return max(16, _round_up(m, 16))   # bf16 packs 2 rows per sublane
    best = None
    for cand in (512, 256, 128):           # pick tm minimizing M padding
        pad = _round_up(m, cand)
        if best is None or pad < best[0]:
            best = (pad, cand)
    return best[1]


def classifier_apply(z_n, params, *, force_pallas=False):
    """Forward pass of PreTrainingClassifier: z_n @ W.T + b."""
    *lead, k = z_n.shape
    assert k == params["k"], "zn_size mismatch with prepared params"
    n = params["n"]
    m = 1
    for d in lead:
        m *= d
    out_dtype = z_n.dtype

    if not force_pallas and (m * n * k) < (1 << 21):
        # Tiny problems: per-grid-step (~0.35 us) + DMA setup dwarf the matmul.
        w = params["w_kn"][:k, :n].astype(z_n.dtype)
        b = params["b2d"][0, :n].astype(z_n.dtype)
        return (jnp.dot(z_n, w) + b).astype(out_dtype)

    k_pad, n_pad = params["k_pad"], params["n_pad"]
    tn, tk = params["tn"], params["tk"]
    cdt = params["compute_dtype"]

    x2d = z_n.reshape(m, k).astype(cdt)
    tm = _pick_tm(m)
    m_pad = _round_up(m, tm)
    if (m_pad, k_pad) != (m, k):
        x2d = jnp.pad(x2d, ((0, m_pad - m), (0, k_pad - k)))

    n_steps = n_pad // tn
    m_steps = m_pad // tm
    k_steps = k_pad // tk

    c_item = jnp.dtype(cdt).itemsize
    o_item = jnp.dtype(out_dtype).itemsize
    vmem_need = (2 * (tm * tk * c_item + tk * tn * c_item
                      + tn * 4 + tm * tn * o_item)
                 + (tm * tn * 4 if k_steps > 1 else 0))
    vmem_limit = int(min(params["vmem_cap"],
                         max(int(vmem_need * 1.5) + (4 << 20), 16 << 20)))

    # Honest traffic estimate: x re-read per N tile; weight re-read per M tile
    # only when K does not fit one tile.
    w_reads = 1 if k_steps == 1 else m_steps
    cost = pl.CostEstimate(
        flops=2 * m_pad * n_pad * k_pad,
        transcendentals=0,
        bytes_accessed=(m_pad * k_pad * c_item * n_steps
                        + k_pad * n_pad * c_item * w_reads
                        + n_pad * 4
                        + m_pad * n_pad * o_item))

    if k_steps == 1:
        # Common classifier-head case: full K in one tile -> no accumulator.
        grid_spec = pltpu.PrefetchScalarGridSpec(
            num_scalar_prefetch=0,
            grid=(n_steps, m_steps),          # M innermost: weight stripe stays
            in_specs=[                        # VMEM-resident across M tiles
                pl.BlockSpec((tm, tk), lambda j, i: (i, 0)),     # x
                pl.BlockSpec((tk, tn), lambda j, i: (0, j)),     # weight [K, N]
                pl.BlockSpec((1, tn), lambda j, i: (0, j)),      # bias (f32)
            ],
            out_specs=pl.BlockSpec((tm, tn), lambda j, i: (i, j)),
        )
        kernel = _linear_single_k_kernel
        dims = ("parallel", "parallel")
    else:
        grid_spec = pltpu.PrefetchScalarGridSpec(
            num_scalar_prefetch=0,
            grid=(n_steps, m_steps, k_steps),  # K innermost (reduction)
            in_specs=[
                pl.BlockSpec((tm, tk), lambda j, i, kk: (i, kk)),
                pl.BlockSpec((tk, tn), lambda j, i, kk: (kk, j)),
                pl.BlockSpec((1, tn), lambda j, i, kk: (0, j)),
            ],
            out_specs=pl.BlockSpec((tm, tn), lambda j, i, kk: (i, j)),
            scratch_shapes=[pltpu.VMEM((tm, tn), jnp.float32)],
        )
        kernel = _linear_multi_k_kernel
        dims = ("parallel", "parallel", "arbitrary")

    out = pl.pallas_call(
        kernel,
        out_shape=jax.ShapeDtypeStruct((m_pad, n_pad), out_dtype),
        grid_spec=grid_spec,
        compiler_params=pltpu.CompilerParams(
            dimension_semantics=dims,
            vmem_limit_bytes=vmem_limit),
        cost_estimate=cost,
    )(x2d, params["w_kn"], params["b2d"])

    if (m_pad, n_pad) != (m, n):
        out = out[:m, :n]
    return out.reshape(*lead, n)


def pretraining_classifier(z_n, weight, bias, *, compute_dtype=jnp.bfloat16,
                           force_pallas=False):
    """Convenience wrapper (preps params per call).

    In a real training loop call prepare_classifier_params() ONCE at init and
    reuse the returned params with classifier_apply().
    """
    params = prepare_classifier_params(weight, bias,
                                       compute_dtype=compute_dtype)
    return classifier_apply(z_n, params, force_pallas=force_pallas)


if __name__ == "__main__":
    # Small shapes consistent with a pretraining-head forward:
    # batch=2, seq=8, zn_size(hidden)=32, output_size=64.
    batch, seq, zn_size, output_size = 2, 8, 32, 64

    key = jax.random.PRNGKey(0)
    k_x, k_w, k_b = jax.random.split(key, 3)

    z_n = jax.random.normal(k_x, (batch, seq, zn_size), dtype=jnp.float32)
    # Deterministic init mirroring nn.Linear's uniform(-1/sqrt(in), 1/sqrt(in))
    bound = 1.0 / jnp.sqrt(jnp.float32(zn_size))
    weight = jax.random.uniform(
        k_w, (output_size, zn_size), minval=-bound, maxval=bound,
        dtype=jnp.float32)
    bias = jax.random.uniform(
        k_b, (output_size,), minval=-bound, maxval=bound, dtype=jnp.float32)

    # One-time init-side prep (transpose/pad/cast), then the per-call apply.
    params = prepare_classifier_params(weight, bias)
    out = classifier_apply(z_n, params, force_pallas=True)
    out = jax.block_until_ready(out)

    # Sanity-check against plain f32 JAX reference. bf16 MXU operands
    # (f32 accumulation) -> loosened tolerance; this is a test artifact.
    ref = z_n @ weight.T + bias
    assert out.shape == (batch, seq, output_size)
    assert out.dtype == z_n.dtype
    assert jnp.allclose(out, ref, atol=3e-2, rtol=3e-2), (
        float(jnp.max(jnp.abs(out - ref))))

    print("KERNEL_OK")
</pallas_src>

<mosaic_0001>
module attributes {stable_mosaic.version = 11 : i64} {
  func.func @_linear_single_k_kernel(%arg0: i32, %arg1: i32, %arg2: memref<16x128xbf16, #tpu.memory_space<vmem>>, %arg3: memref<128x128xbf16, #tpu.memory_space<vmem>>, %arg4: memref<1x128xf32, #tpu.memory_space<vmem>>, %arg5: memref<16x128xf32, #tpu.memory_space<vmem>>) attributes {dimension_semantics = [#tpu.dimension_semantics<parallel>, #tpu.dimension_semantics<parallel>], iteration_bounds = array<i64: 1, 1>, scalar_prefetch = 0 : i64, scratch_operands = 0 : i64, tpu.core_type = #tpu.core_type<tc>, window_params = [{transform_indices = @transform_0, window_bounds = array<i64: 16, 128>}, {transform_indices = @transform_1, window_bounds = array<i64: 128, 128>}, {transform_indices = @transform_2, window_bounds = array<i64: 1, 128>}, {transform_indices = @transform_3, window_bounds = array<i64: 16, 128>}]} {
    %c0 = arith.constant 0 : index
    %c0_0 = arith.constant 0 : index
    %0 = vector.load %arg2[%c0, %c0_0] : memref<16x128xbf16, #tpu.memory_space<vmem>>, vector<16x128xbf16>
    %c0_1 = arith.constant 0 : index
    %c0_2 = arith.constant 0 : index
    %1 = vector.load %arg3[%c0_1, %c0_2] : memref<128x128xbf16, #tpu.memory_space<vmem>>, vector<128x128xbf16>
    %cst = arith.constant dense<0.000000e+00> : vector<16x128xf32>
    %2 = tpu.matmul %0, %1, %cst {dimension_numbers = #tpu.dot_dimension_numbers<[1], [0], [0], [1], [0, 0, 1, 1], [], []>} : vector<16x128xbf16>, vector<128x128xbf16>, vector<16x128xf32> -> vector<16x128xf32>
    %c0_3 = arith.constant 0 : index
    %c0_4 = arith.constant 0 : index
    %3 = vector.load %arg4[%c0_3, %c0_4] : memref<1x128xf32, #tpu.memory_space<vmem>>, vector<1x128xf32>
    %4 = vector.broadcast %3 : vector<1x128xf32> to vector<16x128xf32>
    %5 = arith.addf %2, %4 : vector<16x128xf32>
    %c0_5 = arith.constant 0 : index
    %c0_6 = arith.constant 0 : index
    %6 = vector.load %arg5[%c0_5, %c0_6] : memref<16x128xf32, #tpu.memory_space<vmem>>, vector<16x128xf32>
    tpu.vector_store %arg5[%c0_5, %c0_6], %5 {strides = array<i32>} : memref<16x128xf32, #tpu.memory_space<vmem>>, vector<16x128xf32>,
    return
  }
  func.func @transform_0(%arg0: i32, %arg1: i32) -> (i32, i32) {
    %c0_i32 = arith.constant 0 : i32
    %c0_i32_0 = arith.constant 0 : i32
    return %arg1, %c0_i32 : i32, i32
  }
  func.func @transform_1(%arg0: i32, %arg1: i32) -> (i32, i32) {
    %c0_i32 = arith.constant 0 : i32
    %c0_i32_0 = arith.constant 0 : i32
    return %c0_i32, %arg0 : i32, i32
  }
  func.func @transform_2(%arg0: i32, %arg1: i32) -> (i32, i32) {
    %c0_i32 = arith.constant 0 : i32
    %c0_i32_0 = arith.constant 0 : i32
    return %c0_i32, %arg0 : i32, i32
  }
  func.func @transform_3(%arg0: i32, %arg1: i32) -> (i32, i32) {
    %c0_i32 = arith.constant 0 : i32
    return %arg1, %arg0 : i32, i32
  }
}

</mosaic_0001>

<bundles_post_ra>
// kernel: tpu_custom_call.1
= control target key start
LH: loop header
LB: loop body
LE: loop exit
PB: predicated region body
PF: predicated region fallthrough
CT: control target
= control target key end

     0   :  { %8 = vsyncpa [#allocation3], 0  ;;  %s329_s0 = inlined_call_operand.hbm [shape: bf16[16,128], index: 0, kind: input, shape index: {}]   ;;  %s330_s1 = inlined_call_operand.hbm [shape: bf16[128,128], index: 1, kind: input, shape index: {}]   ;;  %s331_s2 = inlined_call_operand.vmem [shape: f32[1,128], index: 2, kind: input, shape index: {}]   ;;  %s332_s3 = inlined_call_operand.hbm [shape: f32[16,128], index: 3, kind: output, shape index: {}]  }
   0x1   :  { %9 = vsyncpa [#allocation6], 0 }
   0x2   :  { %10 = vsyncpa [#allocation4], 0  ;;  %s15_s14 = sshll.u32 %s329_s0, 4  ;;  %s290_s15 = smov [#allocation2]   ;;  %s16_s14 = int_to_ptr.hbm [resolvable:$true] %s15_s14 }
   0x3   :  { %s17_s16 = sshll.u32 %s290_s15, 4  ;;  %s28_s19 = sshll.u32 %s330_s1, 4  ;;  %s18_s16 = int_to_ptr.vmem [resolvable:$true] %s17_s16  ;;  %s29_s19 = int_to_ptr.hbm [resolvable:$true] %s28_s19 }
   0x4   :  { %s291_s20 = smov 64   ;;  %s292_s21 = smov 4  }
   0x5   :  { %23 = dma.hbm_to_vmem [thread:$0]  %s16_s14, 128, %s18_s16, [#allocation3], %s291_s20, %s291_s20, %s292_s21  }
   0x6   :  { %s293_s22 = smov [#allocation5]  }
   0x7   :  { %s30_s23 = sshll.u32 %s293_s22, 4  ;;  %s31_s23 = int_to_ptr.vmem [resolvable:$true] %s30_s23 }
   0x8   :  { %36 = dma.hbm_to_vmem [thread:$0]  %s29_s19, 1024, %s31_s23, [#allocation6], %s291_s20, %s291_s20, %s292_s21  }
   0x9   :  { %284 = dma.done.wait [#allocation3], 128  }
   0xa   :  { %285 = vsyncadd [#allocation3], 4294967168 }
   0xb   :  { %286 = dma.done.wait [#allocation6], 1024  }
   0xc   :  { %287 = vsyncadd [#allocation6], 4294966272  ;;  %v203_v0 = vld [vmem:[#allocation5 + $0x38] sm:$0xff]  ;;  %v202_v1 = vld [vmem:[#allocation5 + $0x30] sm:$0xff]  ;;  %s294_s24 = smov [#allocation7]   ;;  %s145_s28 = sshll.u32 %s332_s3, 4  ;;  %s146_s28 = int_to_ptr.hbm [resolvable:$true] %s145_s28 }
   0xd   :  { %123 = vmatpush.bf16.msra.mxu0 %v203_v0  ;;  %v201_v2 = vld [vmem:[#allocation5 + $0x28] sm:$0xff]  ;;  %v200_v3 = vld [vmem:[#allocation5 + $0x20] sm:$0xff]  ;;  %v199_v4 = vld [vmem:[#allocation5 + $0x18] sm:$0xff]  ;;  %s143_s25 = sshll.u32 %s294_s24, 4  ;;  %s295_s29 = smov 128   ;;  %s144_s25 = int_to_ptr.vmem [resolvable:$true] %s143_s25 }
   0xe   :  { %v198_v5 = vld [vmem:[#allocation5 + $0x10] sm:$0xff]  ;;  %v197_v6 = vld [vmem:[#allocation5 + $0x8] sm:$0xff]  ;;  %v196_v7 = vld [vmem:[#allocation5] sm:$0xff]  ;;  %s296_s30 = smov 8  }
   0xf   :  { %v195_v8 = vld [vmem:[#allocation2] sm:$0xff] }
  0x10   :  { %v211_v9 = vld [vmem:[%s331_s2] ss:$0 sm:$0xff] }
  0x11   :  { %124 = vmatpush.bf16.msra.mxu0 %v202_v1 }
  0x15   :  { %125 = vmatpush.bf16.msra.mxu0 %v201_v2 }
  0x19   :  { %126 = vmatpush.bf16.msra.mxu0 %v200_v3 }
  0x1d   :  { %127 = vmatpush.bf16.msra.mxu0 %v199_v4 }
  0x21   :  { %128 = vmatpush.bf16.msra.mxu0 %v198_v5 }
  0x25   :  { %129 = vmatpush.bf16.msra.mxu0 %v197_v6 }
  0x29   :  { %130 = vmatpush.bf16.msra.mxu0 %v196_v7 }
  0x2c   :  { %131 = vmatmul.bf16.vlgmr.msra.gmra.mxu0 %v195_v8 }
  0xa9   :  { %v132_v10 = vpop.f32.mrf.mxu0 }
  0xaa   :  { %v133_v11 = vadd.f32 %v211_v9, %v132_v10 }
  0xac   :  { %137 = vst [vmem:[#allocation7] sm:$0xff] %v133_v11 }
  0xb1   :  { %v134_v12 = vpop.f32.mrf.mxu0 }
  0xb2   :  { %v135_v13 = vadd.f32 %v211_v9, %v134_v12 }
  0xb4   :  { %138 = vst [vmem:[#allocation7 + $0x8] sm:$0xff] %v135_v13 }
  0xb5   :  { %151 = dma.vmem_to_hbm [thread:$0]  %s144_s25, 256, %s146_s28, [#allocation4], %s295_s29, %s295_s29, %s296_s30  }
  0xb6   :  { %288 = dma.done.wait [#allocation4], 256  }
  0xb7   :  { %289 = vsyncadd [#allocation4], 4294967040 }
  0xb8   :  { %156 = vsyncpa [#allocation3], 1 }
  0xb9   :  { %157 = vsyncpa [#allocation6], 1 }
  0xba   :  { %158 = vsyncpa [#allocation4], 1 }

</bundles_post_ra>
